<compile_context>
chip_gen: v6e
topology: v6e:2x2x1
jax: 0.10.0
libtpu: 0.0.40
codegen_flags: <defaults>
</compile_context>

<pallas_src>
import functools

import jax
import jax.numpy as jnp
from jax.experimental import pallas as pl
from jax.experimental.pallas import tpu as pltpu


_LANE = 128
_MAX_SPATIAL_TILE = 2048   # lanes per block: mem-bound sweet spot (512-2048)
_MAX_ROW_TILE = 1024       # output rows (C_out*4 taps) per block
_MXU_MIN_K = 16            # below this the contraction runs as VPU FMAs


def _round_up(x, m):
    return (x + m - 1) // m * m


def _vmem_budget_bytes():
    """Per-generation scoped-VMEM budget for this kernel."""
    phys = None
    try:
        info = pltpu.get_tpu_info()
        phys = getattr(info, "vmem_capacity_bytes", None)
    except Exception:
        phys = None
    if phys is None:
        phys = 64 * 1024 * 1024        # conservative: v7x has 64 MiB per TC
    return int(min(phys // 2, 64 * 1024 * 1024))


def _pick_row_tile(n_out):
    """Largest multiple-of-8 divisor of n_out that fits _MAX_ROW_TILE."""
    if n_out <= _MAX_ROW_TILE:
        return n_out
    for d in range(_MAX_ROW_TILE, 7, -8):
        if n_out % d == 0:
            return d
    return n_out   # no clean divisor; fall back to the full row extent


def _deconv_kernel(x_ref, w_ref, b_ref, o_ref):
    """One (batch, spatial-tile, row-tile) block.

    x_ref: (1, C_in, ts)   activations, spatial tile in lanes
    w_ref: (tn, C_in)      taps-major weight rows for this row tile
    b_ref: (tn, 1)         f32 bias, repeated per tap
    o_ref: (1, tn, ts)     lane-dense output block
    """
    x = x_ref[0]                # (C_in, ts)
    w = w_ref[...]              # (tn, C_in)
    c_in = x.shape[0]

    if c_in >= _MXU_MIN_K:
        acc = jnp.dot(w, x, preferred_element_type=jnp.float32)
    else:
        # K << 128 would waste the MXU; do C_in broadcast-FMAs on the VPU.
        acc = w[:, 0:1].astype(jnp.float32) * x[0:1, :].astype(jnp.float32)
        for ci in range(1, c_in):
            acc = acc + (w[:, ci:ci + 1].astype(jnp.float32)
                         * x[ci:ci + 1, :].astype(jnp.float32))

    o_ref[0] = (acc + b_ref[...].astype(jnp.float32)).astype(o_ref.dtype)


def single_deconv3d_block(x, weight, bias, *, spatial_tile=None, compute_dtype=None):
    """ConvTranspose3d(kernel=(1,2,2), stride=(1,2,2), padding=0).

    Args:
      x:      (N, C_in, D, H, W)       PyTorch NCDHW layout
      weight: (C_in, C_out, 1, 2, 2)   PyTorch ConvTranspose3d weight layout
      bias:   (C_out,)
      spatial_tile:  override lane-tile (must be a multiple of 128 or >= D*H*W)
      compute_dtype: e.g. jnp.bfloat16 to halve HBM traffic (f32 accumulation)
    Returns:
      (N, C_out, D, 2H, 2W)
    """
    N, C_in, D, H, W = x.shape
    C_out = weight.shape[1]
    assert weight.shape == (C_in, C_out, 1, 2, 2), weight.shape
    n_out = C_out * 4
    S = D * H * W
    out_dtype = x.dtype
    cdt = compute_dtype if compute_dtype is not None else x.dtype
    cbytes = jnp.dtype(cdt).itemsize
    obytes = jnp.dtype(out_dtype).itemsize

    # ---- free layout changes (no HBM transpose of the activations) ----
    x3 = x.reshape(N, C_in, S).astype(cdt)               # (N, C_in, S)
    w_t = weight.reshape(C_in, n_out).T.astype(cdt)      # (n_out, C_in), taps-major
    b_col = jnp.repeat(bias.astype(jnp.float32), 4).reshape(n_out, 1)

    # ---- row tile (taps-major output rows), then spatial tile vs VMEM budget ----
    tn = _pick_row_tile(n_out)
    budget = _vmem_budget_bytes()
    fixed = 2 * tn * C_in * cbytes + 2 * tn * 4            # double-buffered w + bias
    per_col = 2 * (C_in * cbytes + tn * obytes)            # double-buffered x + out per lane
    if spatial_tile is None:
        ts = int((0.8 * budget - fixed) // per_col)
        ts = max(_LANE, (ts // _LANE) * _LANE)
        ts = min(ts, _MAX_SPATIAL_TILE)
    else:
        ts = int(spatial_tile)
    if S <= _LANE:
        ts = S                                             # full-dim block is always legal
    else:
        ts = min(ts, _round_up(S, _LANE))
    budget = max(budget, int(1.25 * (fixed + per_col * ts)))

    # pad spatial so the lane-dense tile divides it evenly (handles ragged tails)
    S_pad = _round_up(S, ts)
    if S_pad != S:
        x3 = jnp.pad(x3, ((0, 0), (0, 0), (0, S_pad - S)))

    # Row-tile axis innermost: x block index is unchanged across it, so the
    # activations stay VMEM-resident and are not re-DMA'd per row tile.
    grid = (N, S_pad // ts, n_out // tn)

    cost = pl.CostEstimate(
        flops=2 * N * S_pad * C_in * n_out,
        transcendentals=0,
        bytes_accessed=(N * C_in * S_pad * cbytes * (n_out // tn)
                        + n_out * C_in * cbytes
                        + n_out * 4
                        + N * n_out * S_pad * obytes),
    )

    out_flat = pl.pallas_call(
        _deconv_kernel,
        out_shape=jax.ShapeDtypeStruct((N, n_out, S_pad), out_dtype),
        grid_spec=pltpu.PrefetchScalarGridSpec(
            num_scalar_prefetch=0,
            grid=grid,
            in_specs=[
                pl.BlockSpec((1, C_in, ts), lambda n, s, o: (n, 0, s)),
                pl.BlockSpec((tn, C_in), lambda n, s, o: (o, 0)),
                pl.BlockSpec((tn, 1), lambda n, s, o: (o, 0)),
            ],
            out_specs=pl.BlockSpec((1, tn, ts), lambda n, s, o: (n, o, s)),
        ),
        compiler_params=pltpu.CompilerParams(
            dimension_semantics=("parallel", "parallel", "parallel"),
            vmem_limit_bytes=int(budget),
        ),
        cost_estimate=cost,
    )(x3, w_t, b_col)

    # ---- pixel-shuffle the 4 taps into the 2x2-upsampled NCDHW' output ----
    # TODO(synk): fuse this interleave into the kernel's output DMA.
    out = out_flat[:, :, :S].reshape(N, C_out, 2, 2, D, H, W)      # (n,co,kh,kw,d,h,w)
    out = jnp.transpose(out, (0, 1, 4, 5, 2, 6, 3))                # (n,co,d,h,kh,w,kw)
    return out.reshape(N, C_out, D, 2 * H, 2 * W)


def _reference(x, weight, bias):
    """Plain-JAX reference for the same ConvTranspose3d (no-overlap case)."""
    N, C_in, D, H, W = x.shape
    C_out = weight.shape[1]
    w = weight[:, :, 0]                                    # (C_in, C_out, 2, 2)
    y = jnp.einsum('ncdhw,cokl->nodhkwl', x, w)
    y = y + bias[None, :, None, None, None, None, None]
    return y.reshape(N, C_out, D, 2 * H, 2 * W)


def _make_inputs(key, N, C_in, C_out, D, H, W):
    k_x, k_w, k_b = jax.random.split(key, 3)
    x = jax.random.normal(k_x, (N, C_in, D, H, W), dtype=jnp.float32)
    bound = (1.0 / (C_in * 1 * 2 * 2)) ** 0.5
    weight = jax.random.uniform(k_w, (C_in, C_out, 1, 2, 2),
                                minval=-bound, maxval=bound, dtype=jnp.float32)
    bias = jax.random.uniform(k_b, (C_out,),
                              minval=-bound, maxval=bound, dtype=jnp.float32)
    return x, weight, bias


if __name__ == "__main__":
    key = jax.random.PRNGKey(0)
    k1, k2 = jax.random.split(key)

    fwd = jax.jit(single_deconv3d_block)
    fwd_bf16 = jax.jit(functools.partial(single_deconv3d_block,
                                         compute_dtype=jnp.bfloat16))

    # Config 1: tiny C_in -> VPU-FMA contraction path, evenly tiled spatial.
    x, w, b = _make_inputs(k1, N=2, C_in=4, C_out=8, D=4, H=8, W=8)
    out = jax.block_until_ready(fwd(x, w, b))
    ref = _reference(x, w, b)
    assert out.shape == (2, 8, 4, 16, 16), out.shape
    assert jnp.allclose(out, ref, atol=1e-5, rtol=1e-5), "f32 mismatch (config 1)"

    # Config 1b: bf16 compute path (f32 accumulation), looser tolerance.
    out_bf = jax.block_until_ready(fwd_bf16(x, w, b))
    assert out_bf.dtype == jnp.float32
    assert jnp.allclose(out_bf, ref, atol=5e-2, rtol=5e-2), "bf16 mismatch"

    # Config 2: larger C_in -> MXU path, ragged spatial -> padding path.
    x2, w2, b2 = _make_inputs(k2, N=2, C_in=32, C_out=16, D=3, H=5, W=12)
    out2 = jax.block_until_ready(fwd(x2, w2, b2))
    ref2 = _reference(x2, w2, b2)
    assert out2.shape == (2, 16, 3, 10, 24), out2.shape
    assert jnp.allclose(out2, ref2, atol=1e-4, rtol=1e-4), "f32 mismatch (config 2)"

    print("KERNEL_OK")
</pallas_src>

<mosaic_0001>
module attributes {stable_mosaic.version = 11 : i64} {
  func.func @_deconv_kernel(%arg0: i32, %arg1: i32, %arg2: i32, %arg3: memref<1x4x256xf32, #tpu.memory_space<vmem>>, %arg4: memref<32x4xf32, #tpu.memory_space<vmem>>, %arg5: memref<32x1xf32, #tpu.memory_space<vmem>>, %arg6: memref<1x32x256xf32, #tpu.memory_space<vmem>>) attributes {dimension_semantics = [#tpu.dimension_semantics<parallel>, #tpu.dimension_semantics<parallel>, #tpu.dimension_semantics<parallel>], iteration_bounds = array<i64: 2, 1, 1>, scalar_prefetch = 0 : i64, scratch_operands = 0 : i64, tpu.core_type = #tpu.core_type<tc>, window_params = [{transform_indices = @transform_0, window_bounds = array<i64: 1, 4, 256>}, {transform_indices = @transform_1, window_bounds = array<i64: 32, 4>}, {transform_indices = @transform_2, window_bounds = array<i64: 32, 1>}, {transform_indices = @transform_3, window_bounds = array<i64: 1, 32, 256>}]} {
    %c0 = arith.constant 0 : index
    %c0_0 = arith.constant 0 : index
    %c0_1 = arith.constant 0 : index
    %0 = vector.load %arg3[%c0, %c0_0, %c0_1] : memref<1x4x256xf32, #tpu.memory_space<vmem>>, vector<1x4x256xf32>
    %1 = vector.shape_cast %0 : vector<1x4x256xf32> to vector<4x256xf32>
    %c0_2 = arith.constant 0 : index
    %c0_3 = arith.constant 0 : index
    %2 = vector.load %arg4[%c0_2, %c0_3] : memref<32x4xf32, #tpu.memory_space<vmem>>, vector<32x4xf32>
    %3 = vector.extract_strided_slice %2 {offsets = [0, 0], sizes = [32, 1], strides = [1, 1]} : vector<32x4xf32> to vector<32x1xf32>
    %4 = vector.extract_strided_slice %1 {offsets = [0, 0], sizes = [1, 256], strides = [1, 1]} : vector<4x256xf32> to vector<1x256xf32>
    %5 = vector.broadcast %3 : vector<32x1xf32> to vector<32x256xf32>
    %6 = vector.broadcast %4 : vector<1x256xf32> to vector<32x256xf32>
    %7 = arith.mulf %5, %6 : vector<32x256xf32>
    %8 = vector.extract_strided_slice %2 {offsets = [0, 1], sizes = [32, 1], strides = [1, 1]} : vector<32x4xf32> to vector<32x1xf32>
    %9 = vector.extract_strided_slice %1 {offsets = [1, 0], sizes = [1, 256], strides = [1, 1]} : vector<4x256xf32> to vector<1x256xf32>
    %10 = vector.broadcast %8 : vector<32x1xf32> to vector<32x256xf32>
    %11 = vector.broadcast %9 : vector<1x256xf32> to vector<32x256xf32>
    %12 = arith.mulf %10, %11 : vector<32x256xf32>
    %13 = arith.addf %7, %12 : vector<32x256xf32>
    %14 = vector.extract_strided_slice %2 {offsets = [0, 2], sizes = [32, 1], strides = [1, 1]} : vector<32x4xf32> to vector<32x1xf32>
    %15 = vector.extract_strided_slice %1 {offsets = [2, 0], sizes = [1, 256], strides = [1, 1]} : vector<4x256xf32> to vector<1x256xf32>
    %16 = vector.broadcast %14 : vector<32x1xf32> to vector<32x256xf32>
    %17 = vector.broadcast %15 : vector<1x256xf32> to vector<32x256xf32>
    %18 = arith.mulf %16, %17 : vector<32x256xf32>
    %19 = arith.addf %13, %18 : vector<32x256xf32>
    %20 = vector.extract_strided_slice %2 {offsets = [0, 3], sizes = [32, 1], strides = [1, 1]} : vector<32x4xf32> to vector<32x1xf32>
    %21 = vector.extract_strided_slice %1 {offsets = [3, 0], sizes = [1, 256], strides = [1, 1]} : vector<4x256xf32> to vector<1x256xf32>
    %22 = vector.broadcast %20 : vector<32x1xf32> to vector<32x256xf32>
    %23 = vector.broadcast %21 : vector<1x256xf32> to vector<32x256xf32>
    %24 = arith.mulf %22, %23 : vector<32x256xf32>
    %25 = arith.addf %19, %24 : vector<32x256xf32>
    %c0_4 = arith.constant 0 : index
    %c0_5 = arith.constant 0 : index
    %26 = vector.load %arg5[%c0_4, %c0_5] : memref<32x1xf32, #tpu.memory_space<vmem>>, vector<32x1xf32>
    %27 = vector.broadcast %26 : vector<32x1xf32> to vector<32x256xf32>
    %28 = arith.addf %25, %27 : vector<32x256xf32>
    %c0_6 = arith.constant 0 : index
    %c0_7 = arith.constant 0 : index
    %c0_8 = arith.constant 0 : index
    %29 = vector.load %arg6[%c0_6, %c0_7, %c0_8] : memref<1x32x256xf32, #tpu.memory_space<vmem>>, vector<1x32x256xf32>
    %30 = vector.shape_cast %29 : vector<1x32x256xf32> to vector<32x256xf32>
    %31 = vector.shape_cast %28 : vector<32x256xf32> to vector<1x32x256xf32>
    tpu.vector_store %arg6[%c0_6, %c0_7, %c0_8], %31 {strides = array<i32>} : memref<1x32x256xf32, #tpu.memory_space<vmem>>, vector<1x32x256xf32>,
    return
  }
  func.func @transform_0(%arg0: i32, %arg1: i32, %arg2: i32) -> (i32, i32, i32) {
    %c0_i32 = arith.constant 0 : i32
    %c0_i32_0 = arith.constant 0 : i32
    return %arg0, %c0_i32, %arg1 : i32, i32, i32
  }
  func.func @transform_1(%arg0: i32, %arg1: i32, %arg2: i32) -> (i32, i32) {
    %c0_i32 = arith.constant 0 : i32
    %c0_i32_0 = arith.constant 0 : i32
    return %arg2, %c0_i32 : i32, i32
  }
  func.func @transform_2(%arg0: i32, %arg1: i32, %arg2: i32) -> (i32, i32) {
    %c0_i32 = arith.constant 0 : i32
    %c0_i32_0 = arith.constant 0 : i32
    return %arg2, %c0_i32 : i32, i32
  }
  func.func @transform_3(%arg0: i32, %arg1: i32, %arg2: i32) -> (i32, i32, i32) {
    %c0_i32 = arith.constant 0 : i32
    return %arg0, %arg2, %arg1 : i32, i32, i32
  }
}

</mosaic_0001>

<bundles_post_ra>
// kernel: single_deconv3d_block.1
= control target key start
LH: loop header
LB: loop body
LE: loop exit
PB: predicated region body
PF: predicated region fallthrough
CT: control target
= control target key end

     0   :  { %s756_s12 = smov 0   ;;  %s758_s13 = smov 0   ;;  %s843_s0 = inlined_call_operand.vmem [shape: f32[2,4,256], index: 0, kind: input, shape index: {}]   ;;  %s844_s1 = inlined_call_operand.vmem [shape: f32[32,4], index: 1, kind: input, shape index: {}]   ;;  %s845_s2 = inlined_call_operand.vmem [shape: f32[32,1], index: 2, kind: input, shape index: {}]   ;;  %s846_s3 = inlined_call_operand.vmem [shape: f32[2,32,256], index: 3, kind: output, shape index: {}]  }
   0x1   :  { %s760_s14 = smov 0  }
   0x2 LB: > { %s32_s15 = sadd.s32 1, %s726_s13  ;;  %p661_p0 = scmp.ge.s32.totalorder %s730_s14, 1  ;;  %s730_s14 = sphi %s760_s14, %s13_s14   ;;  %s726_s13 = sphi %s758_s13, %s848_s13   ;;  %s722_s12 = sphi %s756_s12, %s847_s12  }
   0x3   : > { %p34_p1 = scmp.ge.s32.totalorder %s32_s15, 2  ;;  %p189_p2 = scmp.lt.s32.totalorder %s730_s14, 3 }
   0x5   : > { %s850_s15 = smov (%p34_p1, %s32_s15), 0  ;;  %p190_p3 = pnand %p661_p0, %p189_p2 }
   0x6   : > { %p237_p4 = scmp.lt.s32.totalorder (!%p190_p3), %s722_s12, 1 }
   0x7   : > { %193 = sbr.rel (%p190_p3) target bundleno = 189 (0xbd), region = 32 }
   0xc   : > { %v277_v0 = vld [vmem:[%s844_s1 + $0x10] sm:$0xff]  ;;  %v275_v1 = vld [vmem:[%s844_s1] sm:$0xff]  ;;  %v732_v2 = vmov 0   ;;  %v278_v3 = vld [vmem:[%s844_s1 + $0x18] sm:$0xff]  ;;  %v733_v5 = vmov 1   ;;  %v734_v6 = vmov 2   ;;  %v300_v16 = vlaneseq }
   0xd   : > { %699 = vset.pattern.permute.xlu1 %v732_v2  ;;  %698 = vset.pattern.permute.xlu0 %v732_v2  ;;  %v276_v4 = vld [vmem:[%s844_s1 + $0x8] sm:$0xff]  ;;  %v735_v7 = vmov 3   ;;  %v476_v9 = vld [vmem:[%s845_s2] sm:$0xff]  ;;  %v478_v10 = vld [vmem:[%s845_s2 + $0x10] sm:$0xff]  ;;  %s852_s12 = smov (!%p237_p4, %s722_s12), 1 }
   0xe   : > { %291 = vperm.xlu1 %699, %v277_v0   ;;  %281 = vperm.xlu0 %698, %v275_v1   ;;  %v477_v8 = vld [vmem:[%s845_s2 + $0x8] sm:$0xff]  ;;  %v479_v11 = vld [vmem:[%s845_s2 + $0x18] sm:$0xff]  ;;  %s668_s5 = sshll.u32 %s852_s12, 3  ;;  %v301_v19 = vshrl.u32 %v300_v16, 7  ;;  %s669_s9 = sshll.u32 %s852_s12, 6 }
   0xf   : > { %s244_s8 = scalar_lea.vmem %s843_s0, %s668_s5  ;;  %s822_s12 = scalar_lea.vmem %s846_s3, %s669_s9 }
  0x10   : > { %v344_v22 = vsub.s32 1, %v301_v19  ;;  %v348_v23 = vsub.s32 5, %v301_v19  ;;  %v302_v24 = vsub.s32 0, %v301_v19  ;;  %v306_v25 = vsub.s32 4, %v301_v19  ;;  %v274_v28 = vld [vmem:[%s244_s8] sm:$0xff] }
  0x11   : > { %v394_v26 = vsub.s32 2, %v301_v19  ;;  %v398_v27 = vsub.s32 6, %v301_v19  ;;  %v444_v37 = vsub.s32 3, %v301_v19  ;;  %v448_v38 = vsub.s32 7, %v301_v19 }
  0x12   : > { %296 = vperm.xlu1 %699, %v278_v3   ;;  %286 = vperm.xlu0 %698, %v276_v4   ;;  %v345_v29 = vrot.slane %v274_v28, %v344_v22  ;;  %v349_v30 = vrot.slane %v274_v28, %v348_v23  ;;  %v303_v33 = vrot.slane %v274_v28, %v302_v24 }
  0x13   : > { %v307_v34 = vrot.slane %v274_v28, %v306_v25  ;;  %v395_v35 = vrot.slane %v274_v28, %v394_v26  ;;  %v399_v36 = vrot.slane %v274_v28, %v398_v27  ;;  %v445_v47 = vrot.slane %v274_v28, %v444_v37 }
  0x14   : > { %v355_v39 = vrot.slane %v345_v29, %v344_v22  ;;  %v359_v40 = vrot.slane %v349_v30, %v344_v22  ;;  %v313_v43 = vrot.slane %v303_v33, %v302_v24  ;;  %v449_v48 = vrot.slane %v274_v28, %v448_v38 }
  0x15   : > { %v317_v44 = vrot.slane %v307_v34, %v302_v24  ;;  %v405_v45 = vrot.slane %v395_v35, %v394_v26  ;;  %v409_v46 = vrot.slane %v399_v36, %v394_v26  ;;  %v455_v63 = vrot.slane %v445_v47, %v444_v37 }
  0x16   : > { %701 = vset.pattern.permute.xlu1 %v733_v5  ;;  %700 = vset.pattern.permute.xlu0 %v733_v5 }
  0x17   : > { %331 = vperm.xlu1 %701, %v276_v4   ;;  %327 = vperm.xlu0 %700, %v275_v1  }
  0x1b   : > { %335 = vperm.xlu1 %701, %v277_v0   ;;  %339 = vperm.xlu0 %700, %v278_v3  }
  0x1f   : > { %702 = vset.pattern.permute.xlu1 %v734_v6  ;;  %703 = vset.pattern.permute.xlu0 %v734_v6 }
  0x20   : > { %377 = vperm.xlu1 %702, %v275_v1   ;;  %381 = vperm.xlu0 %703, %v276_v4  }
  0x24   : > { %385 = vperm.xlu1 %702, %v277_v0   ;;  %704 = vset.pattern.permute.xlu0 %v735_v7 }
  0x25   : > { %427 = vperm.xlu0 %704, %v275_v1  }
  0x28   : > { %389 = vperm.xlu1 %702, %v278_v3  }
  0x29   : > { %439 = vperm.xlu0 %704, %v278_v3  }
  0x2c   : > { %705 = vset.pattern.permute.xlu1 %v735_v7 }
  0x2d   : > { %431 = vperm.xlu1 %705, %v276_v4   ;;  %707 = vset.pattern.permute.xlu0 %v732_v2 }
  0x2e   : > { %487 = vperm.xlu0 %707, %v477_v8  }
  0x31   : > { %435 = vperm.xlu1 %705, %v277_v0   ;;  %v459_v0 = vrot.slane %v449_v48, %v444_v37 }
  0x35   : > { %706 = vset.pattern.permute.xlu1 %v732_v2 }
  0x36   : > { %482 = vperm.xlu1 %706, %v476_v9  }
  0x3a   : > { %492 = vperm.xlu1 %706, %v478_v10  }
  0x3e   : > { %497 = vperm.xlu1 %706, %v479_v11  }
  0x89   : > { %v800_v12 = vpop.permute.xlu1 %291  ;;  %v282_v13 = vpop.permute.xlu0 %281 }
  0x8a   : > { %v318_v54 = vmul.f32 %v313_v43, %v282_v13  ;;  %v319_v55 = vmul.f32 %v317_v44, %v282_v13  ;;  %v322_v19 = vmul.f32 %v313_v43, %v800_v12  ;;  %v323_v22 = vmul.f32 %v317_v44, %v800_v12 }
  0x8d   : > { %v803_v14 = vpop.permute.xlu1 %296  ;;  %v287_v15 = vpop.permute.xlu0 %286 }
  0x8e   : > { %v320_v49 = vmul.f32 %v313_v43, %v287_v15  ;;  %v321_v50 = vmul.f32 %v317_v44, %v287_v15  ;;  %v324_v29 = vmul.f32 %v313_v43, %v803_v14  ;;  %v325_v12 = vmul.f32 %v317_v44, %v803_v14 }
  0x92   : > { %v332_v17 = vpop.permute.xlu1 %331  ;;  %v328_v18 = vpop.permute.xlu0 %327 }
  0x93   : > { %v362_v51 = vmul.f32 %v355_v39, %v332_v17  ;;  %v363_v52 = vmul.f32 %v359_v40, %v332_v17  ;;  %v360_v56 = vmul.f32 %v355_v39, %v328_v18  ;;  %v361_v57 = vmul.f32 %v359_v40, %v328_v18 }
  0x95   : > { %v370_v61 = vadd.f32 %v362_v51, %v320_v49  ;;  %v371_v62 = vadd.f32 %v363_v52, %v321_v50  ;;  %v368_v1 = vadd.f32 %v360_v56, %v318_v54  ;;  %v369_v2 = vadd.f32 %v361_v57, %v319_v55 }
  0x96   : > { %v336_v20 = vpop.permute.xlu1 %335  ;;  %v809_v21 = vpop.permute.xlu0 %339 }
  0x97   : > { %v364_v10 = vmul.f32 %v355_v39, %v336_v20  ;;  %v365_v11 = vmul.f32 %v359_v40, %v336_v20  ;;  %v366_v23 = vmul.f32 %v355_v39, %v809_v21  ;;  %v367_v24 = vmul.f32 %v359_v40, %v809_v21 }
  0x99   : > { %v373_v21 = vadd.f32 %v365_v11, %v323_v22  ;;  %v374_v39 = vadd.f32 %v366_v23, %v324_v29  ;;  %v375_v40 = vadd.f32 %v367_v24, %v325_v12 }
  0x9b   : > { %v378_v31 = vpop.permute.xlu1 %377  ;;  %v382_v32 = vpop.permute.xlu0 %381 }
  0x9c   : > { %v412_v58 = vmul.f32 %v405_v45, %v382_v32  ;;  %v413_v59 = vmul.f32 %v409_v46, %v382_v32  ;;  %v410_v3 = vmul.f32 %v405_v45, %v378_v31  ;;  %v411_v4 = vmul.f32 %v409_v46, %v378_v31 }
  0x9d   : > { %v372_v32 = vadd.f32 %v364_v10, %v322_v19 }
  0x9e   : > { %v420_v6 = vadd.f32 %v412_v58, %v370_v61  ;;  %v421_v7 = vadd.f32 %v413_v59, %v371_v62  ;;  %v418_v20 = vadd.f32 %v410_v3, %v368_v1  ;;  %v419_v26 = vadd.f32 %v411_v4, %v369_v2 }
  0x9f   : > { %v386_v41 = vpop.permute.xlu1 %385 }
  0xa0   : > { %v428_v42 = vpop.permute.xlu0 %427  ;;  %v414_v30 = vmul.f32 %v405_v45, %v386_v41  ;;  %v415_v31 = vmul.f32 %v409_v46, %v386_v41 }
  0xa1   : > { %v460_v15 = vmul.f32 %v455_v63, %v428_v42  ;;  %v461_v16 = vmul.f32 %v459_v0, %v428_v42 }
  0xa2   : > { %v422_v43 = vadd.f32 %v414_v30, %v372_v32  ;;  %v423_v14 = vadd.f32 %v415_v31, %v373_v21 }
  0xa3   : > { %v390_v53 = vpop.permute.xlu1 %389  ;;  %v468_v33 = vadd.f32 %v460_v15, %v418_v20  ;;  %v469_v34 = vadd.f32 %v461_v16, %v419_v26 }
  0xa4   : > { %v440_v60 = vpop.permute.xlu0 %439  ;;  %v416_v35 = vmul.f32 %v405_v45, %v390_v53  ;;  %v417_v36 = vmul.f32 %v409_v46, %v390_v53 }
  0xa5   : > { %v466_v47 = vmul.f32 %v455_v63, %v440_v60  ;;  %v467_v48 = vmul.f32 %v459_v0, %v440_v60 }
  0xa6   : > { %v424_v49 = vadd.f32 %v416_v35, %v374_v39  ;;  %v425_v50 = vadd.f32 %v417_v36, %v375_v40 }
  0xa8   : > { %v432_v5 = vpop.permute.xlu1 %431  ;;  %v474_v54 = vadd.f32 %v466_v47, %v424_v49  ;;  %v475_v55 = vadd.f32 %v467_v48, %v425_v50 }
  0xa9   : > { %v462_v8 = vmul.f32 %v455_v63, %v432_v5  ;;  %v463_v9 = vmul.f32 %v459_v0, %v432_v5  ;;  %v488_v13 = vpop.permute.xlu0 %487 }
  0xab   : > { %v470_v17 = vadd.f32 %v462_v8, %v420_v6  ;;  %v471_v18 = vadd.f32 %v463_v9, %v421_v7 }
  0xac   : > { %v436_v25 = vpop.permute.xlu1 %435 }
  0xad   : > { %v502_v27 = vadd.f32 %v488_v13, %v470_v17  ;;  %v503_v28 = vadd.f32 %v488_v13, %v471_v18  ;;  %v464_v37 = vmul.f32 %v455_v63, %v436_v25  ;;  %v465_v38 = vmul.f32 %v459_v0, %v436_v25 }
  0xaf   : > { %510 = vst [vmem:[%s822_s12 + $0x10] sm:$0xff] %v502_v27  ;;  %511 = vst [vmem:[%s822_s12 + $0x18] sm:$0xff] %v503_v28  ;;  %v472_v45 = vadd.f32 %v464_v37, %v422_v43  ;;  %v473_v46 = vadd.f32 %v465_v38, %v423_v14 }
  0xb1   : > { %v483_v42 = vpop.permute.xlu1 %482 }
  0xb2   : > { %v500_v41 = vadd.f32 %v483_v42, %v468_v33  ;;  %v501_v44 = vadd.f32 %v483_v42, %v469_v34 }
  0xb4   : > { %508 = vst [vmem:[%s822_s12] sm:$0xff] %v500_v41  ;;  %509 = vst [vmem:[%s822_s12 + $0x8] sm:$0xff] %v501_v44 }
  0xb5   : > { %v493_v51 = vpop.permute.xlu1 %492 }
  0xb6   : > { %v504_v52 = vadd.f32 %v493_v51, %v472_v45  ;;  %v505_v53 = vadd.f32 %v493_v51, %v473_v46 }
  0xb8   : > { %512 = vst [vmem:[%s822_s12 + $0x20] sm:$0xff] %v504_v52  ;;  %513 = vst [vmem:[%s822_s12 + $0x28] sm:$0xff] %v505_v53 }
  0xb9   : > { %v498_v56 = vpop.permute.xlu1 %497 }
  0xba   : > { %v506_v57 = vadd.f32 %v498_v56, %v474_v54  ;;  %v507_v58 = vadd.f32 %v498_v56, %v475_v55 }
  0xbc   : > { %514 = vst [vmem:[%s822_s12 + $0x30] sm:$0xff] %v506_v57  ;;  %515 = vst [vmem:[%s822_s12 + $0x38] sm:$0xff] %v507_v58 }
  0xbd PF: > { %s13_s14 = sadd.s32 1, %s730_s14   ;;  %s847_s12 = smov %s726_s13 }
  0xbe   : > { %p10_p5 = scmp.ge.s32.totalorder %s13_s14, 4   ;;  %s848_s13 = smov %s850_s15 }
  0xc0   :  { %12 = sbr.rel (!%p10_p5) target bundleno = 2 (0x2), region = 68 }

</bundles_post_ra>
